<compile_context>
chip_gen: v7x
topology: tpu7x:2x2x1
jax: 0.10.0
libtpu: 0.0.40
codegen_flags: <defaults>
</compile_context>

<pallas_src>
import jax
import jax.numpy as jnp
from jax import lax
from jax.experimental import pallas as pl
from jax.experimental.pallas import tpu as pltpu

LANES = 128
SUBLANES = 8
# Feature-tile cap: 8192 rows x 128 lanes -> 4 MiB (f32) per input block,
# ~16 MiB of double-buffered inputs; fits v5e/v6e/v7x VMEM with headroom.
MAX_TILE_ROWS = 8192


def _round_up(n, m):
    return ((n + m - 1) // m) * m


def make_gmm_contrast_loss(reduce="mean", contrast_margin=None,
                           feature_tile_rows=None):
    assert reduce in ["mean", "sum", None]
    # TODO(synk): GmmContrastLoss.compute_sample_loss is abstract in the
    # reference module; a margin-hinge contrast term stands in for it here.
    margin = 1.0 if contrast_margin is None else float(contrast_margin)

    def forward(output_logit, target_logit):
        assert output_logit.shape == target_logit.shape
        assert output_logit.dtype == target_logit.dtype
        B = output_logit.shape[0]
        # Flatten to (B, D) in the native dtype (bf16 stays bf16 over HBM).
        x = output_logit.reshape(B, -1)
        y = target_logit.reshape(B, -1)
        D = x.shape[1]
        itemsize = jnp.dtype(x.dtype).itemsize

        # Sublane packing: 8 rows / vreg for f32, 16 for bf16/f16, 32 for 8-bit.
        packing = max(1, 4 // itemsize)
        sub_mult = SUBLANES * packing

        # Lane-dense layout: fold the feature axis onto (sublane, lane).
        R = pl.cdiv(D, LANES)
        R_pad = _round_up(R, sub_mult)
        D_pad = R_pad * LANES
        if D_pad != D:  # ragged feature dim: zero-pad once, mask inside kernel
            x = jnp.pad(x, ((0, 0), (0, D_pad - D)))
            y = jnp.pad(y, ((0, 0), (0, D_pad - D)))
        x3 = x.reshape(B, R_pad, LANES)
        y3 = y.reshape(B, R_pad, LANES)

        tr_cap = MAX_TILE_ROWS if feature_tile_rows is None else int(feature_tile_rows)
        TR = min(R_pad, max(sub_mult, (tr_cap // sub_mult) * sub_mult))
        n_d = pl.cdiv(R_pad, TR)
        needs_mask = (n_d * TR * LANES) != D
        n_last = n_d - 1
        inv_d = 1.0 / float(D)

        def kernel(x_ref, y_ref, acc_ref):
            d = pl.program_id(1)

            @pl.when(d == 0)
            def _init():
                acc_ref[...] = jnp.zeros_like(acc_ref)

            xb = x_ref[...]                       # (TR, 128), native dtype
            yb = y_ref[...]
            # Element-wise hinge in the native dtype (bf16 VPU on v6e/v7x);
            # widen to f32 only for the accumulation.
            elem = jnp.maximum(margin - jnp.abs(xb - yb), 0.0).astype(jnp.float32)

            def accumulate(e):
                # (TR,128) -> (TR//8, 8, 128); reducing the leading axis is a
                # pure VPU vreg-add tree -- no per-step cross-lane XLU reduce.
                acc_ref[...] += e.reshape(TR // SUBLANES, SUBLANES, LANES).sum(axis=0)

            if needs_mask:
                @pl.when(d < n_last)
                def _bulk():
                    accumulate(elem)

                @pl.when(d == n_last)
                def _tail():
                    row = d * TR + lax.broadcasted_iota(jnp.int32, (TR, LANES), 0)
                    col = lax.broadcasted_iota(jnp.int32, (TR, LANES), 1)
                    feat = row * LANES + col      # flattened feature index
                    accumulate(jnp.where(feat < D, elem, 0.0))
            else:
                accumulate(elem)

        cost = pl.CostEstimate(
            flops=5 * B * D,
            transcendentals=0,
            bytes_accessed=2 * B * D * itemsize + B * SUBLANES * LANES * 4,
        )
        # Double-buffered inputs + generous allowance for f32 intermediates.
        vmem_need = 4 * TR * LANES * itemsize + 5 * TR * LANES * 4 + (2 << 20)
        vmem_limit = int(min(48 << 20, max(32 << 20, vmem_need)))

        partial = pl.pallas_call(
            kernel,
            out_shape=jax.ShapeDtypeStruct((B, SUBLANES, LANES), jnp.float32),
            grid_spec=pltpu.PrefetchScalarGridSpec(
                num_scalar_prefetch=0,
                grid=(B, n_d),
                in_specs=[
                    pl.BlockSpec((None, TR, LANES), lambda b, d: (b, d, 0)),
                    pl.BlockSpec((None, TR, LANES), lambda b, d: (b, d, 0)),
                ],
                out_specs=pl.BlockSpec((None, SUBLANES, LANES),
                                       lambda b, d: (b, 0, 0)),
            ),
            compiler_params=pltpu.CompilerParams(
                dimension_semantics=("parallel", "arbitrary"),
                vmem_limit_bytes=vmem_limit,
            ),
            cost_estimate=cost,
        )(x3, y3)

        # Single cross-lane/sublane reduce + 1/D scale per sample (tiny), then
        # the module's batch reduction.
        per_sample = jnp.sum(partial, axis=(1, 2)) * inv_d   # (B,) f32

        if reduce == "mean":
            return jnp.mean(per_sample)
        if reduce == "sum":
            return jnp.sum(per_sample)
        return per_sample

    return jax.jit(forward)


def _reference(output_logit, target_logit, reduce="mean", contrast_margin=None):
    margin = 1.0 if contrast_margin is None else float(contrast_margin)
    B = output_logit.shape[0]
    x = output_logit.reshape(B, -1).astype(jnp.float32)
    y = target_logit.reshape(B, -1).astype(jnp.float32)
    per_sample = jnp.mean(jnp.maximum(margin - jnp.abs(x - y), 0.0), axis=1)
    if reduce == "mean":
        return per_sample.mean()
    if reduce == "sum":
        return per_sample.sum()
    return per_sample


if __name__ == "__main__":
    key = jax.random.PRNGKey(0)
    ok = True
    cases = [
        ((2, 4, 16, 16), jnp.float32, None),    # D=1024  -> single reduction step
        ((2, 16, 16, 16), jnp.float32, 8),      # D=4096  -> 4-step accumulation path
        ((2, 16, 16, 16), jnp.bfloat16, None),  # native bf16 HBM + VPU path
        ((2, 3, 10, 10), jnp.float32, None),    # D=300   -> pad-to-128 + tail-mask path
    ]
    for idx, (shape, dtype, tile_rows) in enumerate(cases):
        k1, k2 = jax.random.split(jax.random.fold_in(key, idx))
        out_logit = jax.random.normal(k1, shape, dtype=jnp.float32).astype(dtype)
        tgt_logit = jax.random.normal(k2, shape, dtype=jnp.float32).astype(dtype)
        # bf16 element-wise compute vs f32 reference -> bf16-level tolerance.
        atol, rtol = (2e-3, 2e-2) if dtype == jnp.bfloat16 else (1e-5, 1e-5)
        for reduce in ["mean", "sum", None]:
            fwd = make_gmm_contrast_loss(reduce=reduce, contrast_margin=0.5,
                                         feature_tile_rows=tile_rows)
            out = jax.block_until_ready(fwd(out_logit, tgt_logit))
            ref = _reference(out_logit, tgt_logit, reduce=reduce,
                             contrast_margin=0.5)
            if not jnp.allclose(out, ref, atol=atol, rtol=rtol):
                ok = False

    print("KERNEL_OK" if ok else "KERNEL_MISMATCH")
</pallas_src>

<mosaic_0001>
module attributes {stable_mosaic.version = 11 : i64} {
  func.func @kernel(%arg0: i32, %arg1: i32, %arg2: memref<1x8x128xf32, #tpu.memory_space<vmem>>, %arg3: memref<1x8x128xf32, #tpu.memory_space<vmem>>, %arg4: memref<1x8x128xf32, #tpu.memory_space<vmem>>) attributes {dimension_semantics = [#tpu.dimension_semantics<parallel>, #tpu.dimension_semantics<arbitrary>], iteration_bounds = array<i64: 2, 1>, scalar_prefetch = 0 : i64, scratch_operands = 0 : i64, tpu.core_type = #tpu.core_type<tc>, window_params = [{transform_indices = @transform_0, window_bounds = array<i64: 1, 8, 128>}, {transform_indices = @transform_1, window_bounds = array<i64: 1, 8, 128>}, {transform_indices = @transform_2, window_bounds = array<i64: 1, 8, 128>}]} {
    %c0_i32 = arith.constant 0 : i32
    %0 = arith.cmpi eq, %arg1, %c0_i32 : i32
    %1 = arith.extui %0 : i1 to i32
    %c0_i32_0 = arith.constant 0 : i32
    %2 = arith.cmpi ne, %1, %c0_i32_0 : i32
    scf.if %2 {
      %cst_14 = arith.constant 0.000000e+00 : f32
      %21 = vector.broadcast %cst_14 : f32 to vector<8x128xf32>
      %c0_15 = arith.constant 0 : index
      %c0_16 = arith.constant 0 : index
      %c0_17 = arith.constant 0 : index
      %22 = vector.load %arg4[%c0_15, %c0_16, %c0_17] : memref<1x8x128xf32, #tpu.memory_space<vmem>>, vector<1x8x128xf32>
      %23 = vector.shape_cast %22 : vector<1x8x128xf32> to vector<8x128xf32>
      %24 = vector.shape_cast %21 : vector<8x128xf32> to vector<1x8x128xf32>
      tpu.vector_store %arg4[%c0_15, %c0_16, %c0_17], %24 {strides = array<i32>} : memref<1x8x128xf32, #tpu.memory_space<vmem>>, vector<1x8x128xf32>,
    } else {
    }
    %c0 = arith.constant 0 : index
    %c0_1 = arith.constant 0 : index
    %c0_2 = arith.constant 0 : index
    %3 = vector.load %arg2[%c0, %c0_1, %c0_2] : memref<1x8x128xf32, #tpu.memory_space<vmem>>, vector<1x8x128xf32>
    %4 = vector.shape_cast %3 : vector<1x8x128xf32> to vector<8x128xf32>
    %c0_3 = arith.constant 0 : index
    %c0_4 = arith.constant 0 : index
    %c0_5 = arith.constant 0 : index
    %5 = vector.load %arg3[%c0_3, %c0_4, %c0_5] : memref<1x8x128xf32, #tpu.memory_space<vmem>>, vector<1x8x128xf32>
    %6 = vector.shape_cast %5 : vector<1x8x128xf32> to vector<8x128xf32>
    %7 = arith.subf %4, %6 : vector<8x128xf32>
    %8 = math.absf %7 : vector<8x128xf32>
    %cst = arith.constant 5.000000e-01 : f32
    %9 = vector.broadcast %cst : f32 to vector<8x128xf32>
    %10 = arith.subf %9, %8 : vector<8x128xf32>
    %cst_6 = arith.constant 0.000000e+00 : f32
    %11 = vector.broadcast %cst_6 : f32 to vector<8x128xf32>
    %12 = arith.maximumf %10, %11 : vector<8x128xf32>
    %c0_7 = arith.constant 0 : index
    %c0_8 = arith.constant 0 : index
    %c0_9 = arith.constant 0 : index
    %13 = vector.load %arg4[%c0_7, %c0_8, %c0_9] : memref<1x8x128xf32, #tpu.memory_space<vmem>>, vector<1x8x128xf32>
    %14 = vector.shape_cast %13 : vector<1x8x128xf32> to vector<8x128xf32>
    %15 = vector.shape_cast %12 : vector<8x128xf32> to vector<1x8x128xf32>
    %cst_10 = arith.constant dense<0.000000e+00> : vector<8x128xf32>
    %16 = vector.multi_reduction <add>, %15, %cst_10 [0] : vector<1x8x128xf32> to vector<8x128xf32>
    %17 = arith.addf %14, %16 : vector<8x128xf32>
    %c0_11 = arith.constant 0 : index
    %c0_12 = arith.constant 0 : index
    %c0_13 = arith.constant 0 : index
    %18 = vector.load %arg4[%c0_11, %c0_12, %c0_13] : memref<1x8x128xf32, #tpu.memory_space<vmem>>, vector<1x8x128xf32>
    %19 = vector.shape_cast %18 : vector<1x8x128xf32> to vector<8x128xf32>
    %20 = vector.shape_cast %17 : vector<8x128xf32> to vector<1x8x128xf32>
    tpu.vector_store %arg4[%c0_11, %c0_12, %c0_13], %20 {strides = array<i32>} : memref<1x8x128xf32, #tpu.memory_space<vmem>>, vector<1x8x128xf32>,
    return
  }
  func.func @transform_0(%arg0: i32, %arg1: i32) -> (i32, i32, i32) {
    %c0_i32 = arith.constant 0 : i32
    %c0_i32_0 = arith.constant 0 : i32
    return %arg0, %arg1, %c0_i32 : i32, i32, i32
  }
  func.func @transform_1(%arg0: i32, %arg1: i32) -> (i32, i32, i32) {
    %c0_i32 = arith.constant 0 : i32
    %c0_i32_0 = arith.constant 0 : i32
    return %arg0, %arg1, %c0_i32 : i32, i32, i32
  }
  func.func @transform_2(%arg0: i32, %arg1: i32) -> (i32, i32, i32) {
    %c0_i32 = arith.constant 0 : i32
    %c0_i32_0 = arith.constant 0 : i32
    %c0_i32_1 = arith.constant 0 : i32
    return %arg0, %c0_i32, %c0_i32_0 : i32, i32, i32
  }
}

</mosaic_0001>

<bundles_post_ra>
// kernel: forward.1
= control target key start
LH: loop header
LB: loop body
LE: loop exit
PB: predicated region body
PF: predicated region fallthrough
CT: control target
= control target key end

     0   :  { %s358_s9 = smov 0   ;;  %s360_s10 = smov 0   ;;  %s382_s0 = inlined_call_operand.vmem [shape: f32[2,8,128], index: 0, kind: input, shape index: {}]   ;;  %s383_s1 = inlined_call_operand.vmem [shape: f32[2,8,128], index: 1, kind: input, shape index: {}]   ;;  %s384_s2 = inlined_call_operand.vmem [shape: f32[2,8,128], index: 2, kind: output, shape index: {}]  }
   0x1   :  { %s362_s11 = smov 0  }
   0x2 LB: > { %s24_s12 = sadd.s32 1, %s337_s10  ;;  %p288_p0 = scmp.ge.s32.totalorder %s341_s11, 1  ;;  %s341_s11 = sphi %s362_s11, %s12_s11   ;;  %s337_s10 = sphi %s360_s10, %s386_s10   ;;  %s333_s9 = sphi %s358_s9, %s385_s9  }
   0x3   : > { %p26_p1 = scmp.ge.s32.totalorder %s24_s12, 2  ;;  %p142_p2 = scmp.lt.s32.totalorder %s341_s11, 3 }
   0x5   : > { %s388_s12 = smov (%p26_p1, %s24_s12), 0  ;;  %p143_p3 = pnand %p288_p0, %p142_p2 }
   0x6   : > { %p172_p4 = scmp.lt.s32.totalorder (!%p143_p3), %s333_s9, 1 }
   0x7   : > { %146 = sbr.rel (%p143_p3) target bundleno = 28 (0x1c), region = 28 }
   0xe   : > { %s390_s9 = smov (!%p172_p4, %s333_s9), 1 }
   0xf   : > { %s289_s13 = sshll.u32 %s390_s9, 3 }
  0x10   : > { %s178_s16 = scalar_lea.vmem %s382_s0, %s289_s13  ;;  %s185_s19 = scalar_lea.vmem %s383_s1, %s289_s13 }
  0x11   : > { %v195_v0 = vld [vmem:[%s178_s16] sm:$0xff]  ;;  %s189_s22 = scalar_lea.vmem %s384_s2, %s289_s13 }
  0x12   : > { %v196_v1 = vld [vmem:[%s185_s19] sm:$0xff] }
  0x13   : > { %v197_v2 = vsub.f32 %v195_v0, %v196_v1 }
  0x15   : > { %v198_v3 = vand.u32 2147483647, %v197_v2 }
  0x17   : > { %v199_v4 = vsub.f32 0.5, %v198_v3 }
  0x19   : > { %v200_v5 = vmax.f32 %v199_v4, 0.0 }
  0x1b   : > { %204 = vst [vmem:[%s189_s22] sm:$0xff] %v200_v5 }
  0x1c PF: > { %s12_s11 = sadd.s32 1, %s341_s11   ;;  %s385_s9 = smov %s337_s10 }
  0x1d   : > { %p9_p5 = scmp.ge.s32.totalorder %s12_s11, 4   ;;  %s386_s10 = smov %s388_s12 }
  0x1f   :  { %11 = sbr.rel (!%p9_p5) target bundleno = 2 (0x2), region = 65 }

</bundles_post_ra>
